<compile_context>
chip_gen: v7x
topology: tpu7x:2x2x1
jax: 0.10.0
libtpu: 0.0.40
codegen_flags: <defaults>
</compile_context>

<pallas_src>
import jax
import jax.numpy as jnp
from jax.experimental import pallas as pl
from jax.experimental.pallas import tpu as pltpu


_LANE = 1024          # slab width: 8x the 128-lane vreg width (lane-dense stores)
_BLOCK_ROWS = 1024    # 1024 x 1024 f32 tile = 4 MiB; 2 arrays x 2 buffers = 16 MiB


def _encoder_kernel(x_ref, o_ref):
    # Identity "encoding": the abstract Encoder defines no transformation.
    # Straight ref copy: load/store slots only, no VALU work (matters on v5e).
    o_ref[...] = x_ref[...]


def _identity_copy_slab(slab):
    """Identity copy of a lane-dense 2D slab through a Pallas kernel."""
    rows, lanes = slab.shape

    if rows <= _BLOCK_ROWS:
        # Block equals the full array dims -> any row count is legal.
        block_rows = rows
        grid_rows = 1
    else:
        block_rows = _BLOCK_ROWS
        grid_rows = rows // block_rows  # rows were pre-padded to a multiple

    spec = pl.BlockSpec((block_rows, lanes), lambda i: (i, 0))
    nbytes = slab.size * slab.dtype.itemsize

    return pl.pallas_call(
        _encoder_kernel,
        out_shape=jax.ShapeDtypeStruct(slab.shape, slab.dtype),
        grid=(grid_rows,),
        in_specs=[spec],
        out_specs=spec,
        # Output aliases the input HBM buffer: no extra allocation and the
        # write stream lands on the same pages (~2x less HBM pressure).
        input_output_aliases={0: 0},
        compiler_params=pltpu.CompilerParams(
            dimension_semantics=("parallel",),
        ),
        cost_estimate=pl.CostEstimate(
            flops=0, transcendentals=0, bytes_accessed=2 * nbytes
        ),
    )(slab)


@jax.jit
def encoder_forward(x):
    """Pallas-backed forward for the (abstract) Encoder module.

    Accepts an arbitrary-shaped input tensor X (e.g. NCHW (B, C, H, W)) and
    returns it unchanged.  Internally the tensor is flattened to a lane-dense
    (rows, 1024) slab, copied through VMEM in large tiles, and reshaped back.
    """
    orig_shape = x.shape

    n = x.size
    flat = jnp.ravel(x)

    # Pad the flat length up to a multiple of the slab width (static shapes,
    # so these conditionals resolve at trace time).
    n_pad = pl.cdiv(n, _LANE) * _LANE
    if n_pad != n:
        flat = jnp.pad(flat, (0, n_pad - n))
    rows = n_pad // _LANE

    # If the slab is tiled, pad rows to a whole number of blocks so every
    # block is full-sized (no masked edge traffic).
    if rows > _BLOCK_ROWS:
        rows_pad = pl.cdiv(rows, _BLOCK_ROWS) * _BLOCK_ROWS
        if rows_pad != rows:
            flat = jnp.pad(flat, (0, (rows_pad - rows) * _LANE))
            rows = rows_pad

    slab = flat.reshape(rows, _LANE)
    out_slab = _identity_copy_slab(slab)

    return out_slab.reshape(-1)[:n].reshape(orig_shape)


if __name__ == "__main__":
    key = jax.random.PRNGKey(0)
    # Small NCHW-style input consistent with an encoder's expected input tensor.
    x = jax.random.normal(key, (2, 4, 16, 16), dtype=jnp.float32)

    y = encoder_forward(x)
    y = jax.block_until_ready(y)

    # Sanity check: identity semantics (the abstract Encoder defines nothing else).
    assert y.shape == x.shape and y.dtype == x.dtype
    assert bool(jnp.allclose(y, x))

    print("KERNEL_OK")
</pallas_src>

<mosaic_0001>
module attributes {stable_mosaic.version = 11 : i64} {
  func.func @_encoder_kernel(%arg0: i32, %arg1: memref<2x1024xf32, #tpu.memory_space<vmem>>, %arg2: memref<2x1024xf32, #tpu.memory_space<vmem>>) attributes {dimension_semantics = [#tpu.dimension_semantics<parallel>], iteration_bounds = array<i64: 1>, scalar_prefetch = 0 : i64, scratch_operands = 0 : i64, tpu.core_type = #tpu.core_type<tc>, window_params = [{transform_indices = @transform_0, window_bounds = array<i64: 2, 1024>}, {transform_indices = @transform_1, window_bounds = array<i64: 2, 1024>}]} {
    %c0 = arith.constant 0 : index
    %c0_0 = arith.constant 0 : index
    %0 = vector.load %arg1[%c0, %c0_0] : memref<2x1024xf32, #tpu.memory_space<vmem>>, vector<2x1024xf32>
    %c0_1 = arith.constant 0 : index
    %c0_2 = arith.constant 0 : index
    %1 = vector.load %arg2[%c0_1, %c0_2] : memref<2x1024xf32, #tpu.memory_space<vmem>>, vector<2x1024xf32>
    tpu.vector_store %arg2[%c0_1, %c0_2], %0 {strides = array<i32>} : memref<2x1024xf32, #tpu.memory_space<vmem>>, vector<2x1024xf32>,
    return
  }
  func.func @transform_0(%arg0: i32) -> (i32, i32) {
    %c0_i32 = arith.constant 0 : i32
    %c0_i32_0 = arith.constant 0 : i32
    return %arg0, %c0_i32 : i32, i32
  }
  func.func @transform_1(%arg0: i32) -> (i32, i32) {
    %c0_i32 = arith.constant 0 : i32
    %c0_i32_0 = arith.constant 0 : i32
    return %arg0, %c0_i32 : i32, i32
  }
}

</mosaic_0001>

<bundles_post_ra>
// kernel: encoder_forward.1
= control target key start
LH: loop header
LB: loop body
LE: loop exit
PB: predicated region body
PF: predicated region fallthrough
CT: control target
= control target key end

     0   :  { %s38_s0 = inlined_call_operand.vmem [shape: f32[2,1024], index: 0, kind: input, shape index: {}, may-alias: {0,1}]   ;;  %s39_s1 = inlined_call_operand.vmem [shape: f32[2,1024], index: 1, kind: output, shape index: {}, may-alias: {0,1}]  }
   0x1   :  { %v8_v0 = vld [vmem:[%s38_s0] sm:$0xff]  ;;  %v9_v1 = vld [vmem:[%s38_s0 + $0x8] sm:$0xff] }
   0x2   :  { %10 = vst [vmem:[%s39_s1] sm:$0xff] %v8_v0  ;;  %11 = vst [vmem:[%s39_s1 + $0x8] sm:$0xff] %v9_v1 }

</bundles_post_ra>
